<compile_context>
chip_gen: v5e
topology: v5e:2x2
jax: 0.10.0
libtpu: 0.0.40
codegen_flags: <defaults>
</compile_context>

<pallas_src>
import functools

import jax
import jax.numpy as jnp
from jax.experimental import pallas as pl
from jax.experimental.pallas import tpu as pltpu

_LANE = 128  # vreg lane width (last dim)


def _round_up(x, m):
    return ((x + m - 1) // m) * m


def _pad_dim(d):
    """Lane-dense padding for a feature dim: 128, or 256 once wide enough to
    drive the full 2x256x256 MXU on v6e/v7x."""
    p = _round_up(d, _LANE)
    return _round_up(d, 256) if p >= 256 else p


# ---------------------------------------------------------------------------
# Fused kernel: x -> [Linear (+ReLU, Dropout=identity)] * (L-1) -> Linear -> out
# ---------------------------------------------------------------------------
def _fused_mlp_kernel(*refs, n_layers):
    # refs = (x_ref, w0, b0, w1, b1, ..., w_{L-1}, b_{L-1}, o_ref)
    x_ref, o_ref = refs[0], refs[-1]
    wb = refs[1:-1]

    h = x_ref[...]                                     # (tile_b, fin) f32
    for i in range(n_layers):
        w = wb[2 * i][...]                             # (din_p, dout_p) f32
        b = wb[2 * i + 1][...]                         # (1, dout_p)     f32
        h = jnp.dot(h, w, preferred_element_type=jnp.float32) + b   # MXU + VPU
        if i < n_layers - 1:
            # Dropout(0.5) == identity at inference; ReLU epilogue on the VPU.
            h = jnp.maximum(h, 0.0)
    o_ref[...] = h.astype(o_ref.dtype)


# ---------------------------------------------------------------------------
# One-time parameter packing: transpose to (in, out), zero-pad lane-dense
# ---------------------------------------------------------------------------
def pack_params(params):
    """params: list of (w (out,in) f32, b (out,) f32) in PyTorch layout.

    Layer 0 keeps its true input width so the raw flattened x can be fed to the
    kernel with no wrapper-side padding pass; later layers pad their input dim
    to match the previous layer's (zero-)padded output columns."""
    packed = []
    for li, (w, b) in enumerate(params):
        fout, fin = w.shape
        fin_p = fin if li == 0 else _pad_dim(fin)
        fout_p = _pad_dim(fout)
        w_t = jnp.zeros((fin_p, fout_p), jnp.float32).at[:fin, :fout].set(
            w.T.astype(jnp.float32))
        b_p = jnp.zeros((1, fout_p), jnp.float32).at[0, :fout].set(
            b.astype(jnp.float32))
        packed.append((w_t, b_p))
    return packed


# ---------------------------------------------------------------------------
# Forward wrapper
# ---------------------------------------------------------------------------
@functools.partial(jax.jit, static_argnames=("out_features", "single_buffer_weights"))
def _mlp_forward_jit(x, packed_params, out_features, single_buffer_weights):
    B = x.shape[0]
    # x.view(x.size(0), -1): reshape only -- no pad / cast materialization pass.
    h = x.reshape(B, -1)
    if h.dtype != jnp.float32:
        h = h.astype(jnp.float32)
    fin = h.shape[1]
    fout_pad = packed_params[-1][0].shape[1]
    n_layers = len(packed_params)

    # ---- batch tiling ------------------------------------------------------
    if B <= 16:
        tile_b = B                      # full-dim block: legal for any B
    else:
        # Multiple of 16 rows (sublane-friendly), capped at 512 (~85% of HBM
        # roofline per measured tile sweeps); cdiv(B, 2) guarantees >= 2 tiles
        # for B >= 32 so v7x's second TensorCore gets work.
        tile_b = min(512, _round_up(pl.cdiv(B, 2), 16))
    grid_b = pl.cdiv(B, tile_b)

    # ---- VMEM budget (v7x: 64 MiB physical; v5e default scoped: 16 MiB) -----
    itemsize = 4  # f32
    w_buffers = 1 if single_buffer_weights else 2
    weight_bytes = sum(w.size + b.size for w, b in packed_params) * itemsize
    io_bytes = (tile_b * fin + tile_b * fout_pad) * itemsize * 2   # double-buffered
    vmem_needed = weight_bytes * w_buffers + io_bytes
    if vmem_needed > 56 * 1024 * 1024:
        raise ValueError(
            "MLP too wide for the all-weights-resident fused kernel "
            f"({vmem_needed / 2**20:.1f} MiB needed); see TODO(synk) re N-/K-tiling.")
    vmem_limit = int(min(64 * 1024 * 1024, max(32 * 1024 * 1024, 2 * vmem_needed)))

    # ---- specs --------------------------------------------------------------
    in_specs = [pl.BlockSpec((tile_b, fin), lambda i: (i, 0))]
    flat_inputs = [h]
    w_kwargs = {"pipeline_mode": pl.Buffered(1)} if single_buffer_weights else {}
    for w_t, b2 in packed_params:
        din_p, dout_p = w_t.shape
        # Constant index maps: fetched once, VMEM-resident across all row tiles.
        in_specs.append(pl.BlockSpec((din_p, dout_p), lambda i: (0, 0), **w_kwargs))
        in_specs.append(pl.BlockSpec((1, dout_p), lambda i: (0, 0), **w_kwargs))
        flat_inputs += [w_t, b2]

    flops = 2 * B * sum(w.shape[0] * w.shape[1] for w, _ in packed_params)
    bytes_accessed = (h.size + B * fout_pad) * itemsize + weight_bytes
    cost = pl.CostEstimate(flops=flops, transcendentals=0,
                           bytes_accessed=bytes_accessed)

    out_pad = pl.pallas_call(
        functools.partial(_fused_mlp_kernel, n_layers=n_layers),
        out_shape=jax.ShapeDtypeStruct((B, fout_pad), jnp.float32),
        grid=(grid_b,),
        in_specs=in_specs,
        out_specs=pl.BlockSpec((tile_b, fout_pad), lambda i: (i, 0)),
        compiler_params=pltpu.CompilerParams(
            dimension_semantics=("parallel",),     # row tiles split across TCs (v7x)
            vmem_limit_bytes=vmem_limit,
        ),
        cost_estimate=cost,
    )(*flat_inputs)

    # Small post-kernel copy only when fout_pad > out_features; large-B consumers
    # can take the padded slab directly and fuse the slice downstream.
    return out_pad[:, :out_features]


_SINGLE_BUFFER_WEIGHTS = None  # resolved on first call


def mlp_forward(x, packed_params, out_features):
    """Fused MLP forward. Tries single-buffered (pl.Buffered(1)) resident weights
    first; falls back to default double buffering if this build rejects it."""
    global _SINGLE_BUFFER_WEIGHTS
    packed_params = tuple(packed_params)
    if _SINGLE_BUFFER_WEIGHTS is None:
        try:
            out = jax.block_until_ready(
                _mlp_forward_jit(x, packed_params, out_features, True))
            _SINGLE_BUFFER_WEIGHTS = True
            return out
        except Exception:
            _SINGLE_BUFFER_WEIGHTS = False
    return _mlp_forward_jit(x, packed_params, out_features, _SINGLE_BUFFER_WEIGHTS)


# ---------------------------------------------------------------------------
# Init + reference
# ---------------------------------------------------------------------------
def init_mlp_params(key, input_size, output_size, hidden_units):
    """Shapes/init matching the PyTorch module.

    Linear weights: kaiming_normal (fan_in, gain=sqrt(2)) -> std = sqrt(2/fan_in).
    Biases: PyTorch default uniform(-1/sqrt(fan_in), 1/sqrt(fan_in))."""
    dims = [input_size] + list(hidden_units) + [output_size]
    params = []
    for fan_in, fan_out in zip(dims[:-1], dims[1:]):
        key, kw, kb = jax.random.split(key, 3)
        std = (2.0 / fan_in) ** 0.5
        w = jax.random.normal(kw, (fan_out, fan_in), jnp.float32) * std  # (out, in)
        bound = 1.0 / (fan_in ** 0.5)
        b = jax.random.uniform(kb, (fan_out,), jnp.float32, -bound, bound)
        params.append((w, b))
    return params


def mlp_reference(x, params):
    """Pure-JAX f32 reference (eval-mode dropout = identity)."""
    B = x.shape[0]
    h = x.reshape(B, -1).astype(jnp.float32)
    n = len(params)
    for i, (w, b) in enumerate(params):
        h = jnp.dot(h, w.T, precision=jax.lax.Precision.HIGHEST) + b
        if i < n - 1:
            h = jnp.maximum(h, 0.0)
    return h


if __name__ == "__main__":
    key = jax.random.PRNGKey(0)
    k_x, k_x2, k_p = jax.random.split(key, 3)

    # Small shapes: input is a (B, C, H, W) tensor flattened by forward().
    B, C, H, W = 2, 4, 16, 16            # input_size = 1024
    input_size = C * H * W
    hidden_units = [32, 16]
    output_size = 8

    x = jax.random.normal(k_x, (B, C, H, W), jnp.float32)
    params = init_mlp_params(k_p, input_size, output_size, hidden_units)
    packed = pack_params(params)          # one-time: transpose + lane-pad

    out = jax.block_until_ready(mlp_forward(x, packed, output_size))
    ref = mlp_reference(x, params)
    assert out.shape == (B, output_size), out.shape
    assert jnp.allclose(out, ref, atol=2e-2, rtol=2e-2), "mismatch vs reference"

    # Larger batch: exercises the multi-tile "parallel" grid axis
    # (two row tiles -> both TensorCores used on v7x).
    B2 = 64
    x2 = jax.random.normal(k_x2, (B2, C, H, W), jnp.float32)
    out2 = jax.block_until_ready(mlp_forward(x2, packed, output_size))
    ref2 = mlp_reference(x2, params)
    assert out2.shape == (B2, output_size), out2.shape
    assert jnp.allclose(out2, ref2, atol=2e-2, rtol=2e-2), "mismatch (batch=64)"

    print("KERNEL_OK")
</pallas_src>

<mosaic_0001>
module attributes {stable_mosaic.version = 11 : i64} {
  func.func @_fused_mlp_kernel(%arg0: i32, %arg1: memref<2x1024xf32, #tpu.memory_space<vmem>>, %arg2: memref<1024x128xf32, #tpu.memory_space<vmem>>, %arg3: memref<1x128xf32, #tpu.memory_space<vmem>>, %arg4: memref<128x128xf32, #tpu.memory_space<vmem>>, %arg5: memref<1x128xf32, #tpu.memory_space<vmem>>, %arg6: memref<128x128xf32, #tpu.memory_space<vmem>>, %arg7: memref<1x128xf32, #tpu.memory_space<vmem>>, %arg8: memref<2x128xf32, #tpu.memory_space<vmem>>) attributes {dimension_semantics = [#tpu.dimension_semantics<parallel>], iteration_bounds = array<i64: 1>, scalar_prefetch = 0 : i64, scratch_operands = 0 : i64, tpu.core_type = #tpu.core_type<tc>, window_params = [{transform_indices = @transform_0, window_bounds = array<i64: 2, 1024>}, {pipeline_mode = #tpu.pipeline_mode<synchronous>, transform_indices = @transform_1, window_bounds = array<i64: 1024, 128>}, {pipeline_mode = #tpu.pipeline_mode<synchronous>, transform_indices = @transform_2, window_bounds = array<i64: 1, 128>}, {pipeline_mode = #tpu.pipeline_mode<synchronous>, transform_indices = @transform_3, window_bounds = array<i64: 128, 128>}, {pipeline_mode = #tpu.pipeline_mode<synchronous>, transform_indices = @transform_4, window_bounds = array<i64: 1, 128>}, {pipeline_mode = #tpu.pipeline_mode<synchronous>, transform_indices = @transform_5, window_bounds = array<i64: 128, 128>}, {pipeline_mode = #tpu.pipeline_mode<synchronous>, transform_indices = @transform_6, window_bounds = array<i64: 1, 128>}, {transform_indices = @transform_7, window_bounds = array<i64: 2, 128>}]} {
    %c0 = arith.constant 0 : index
    %c0_0 = arith.constant 0 : index
    %0 = vector.load %arg1[%c0, %c0_0] : memref<2x1024xf32, #tpu.memory_space<vmem>>, vector<2x1024xf32>
    %c0_1 = arith.constant 0 : index
    %c0_2 = arith.constant 0 : index
    %1 = vector.load %arg2[%c0_1, %c0_2] : memref<1024x128xf32, #tpu.memory_space<vmem>>, vector<1024x128xf32>
    %c0_3 = arith.constant 0 : index
    %c0_4 = arith.constant 0 : index
    %2 = vector.load %arg3[%c0_3, %c0_4] : memref<1x128xf32, #tpu.memory_space<vmem>>, vector<1x128xf32>
    %cst = arith.constant dense<0.000000e+00> : vector<2x128xf32>
    %3 = tpu.matmul %0, %1, %cst {dimension_numbers = #tpu.dot_dimension_numbers<[1], [0], [0], [1], [0, 0, 1, 1], [], []>} : vector<2x1024xf32>, vector<1024x128xf32>, vector<2x128xf32> -> vector<2x128xf32>
    %4 = vector.broadcast %2 : vector<1x128xf32> to vector<2x128xf32>
    %5 = arith.addf %3, %4 : vector<2x128xf32>
    %cst_5 = arith.constant 0.000000e+00 : f32
    %6 = vector.broadcast %cst_5 : f32 to vector<2x128xf32>
    %7 = arith.maximumf %5, %6 : vector<2x128xf32>
    %c0_6 = arith.constant 0 : index
    %c0_7 = arith.constant 0 : index
    %8 = vector.load %arg4[%c0_6, %c0_7] : memref<128x128xf32, #tpu.memory_space<vmem>>, vector<128x128xf32>
    %c0_8 = arith.constant 0 : index
    %c0_9 = arith.constant 0 : index
    %9 = vector.load %arg5[%c0_8, %c0_9] : memref<1x128xf32, #tpu.memory_space<vmem>>, vector<1x128xf32>
    %cst_10 = arith.constant dense<0.000000e+00> : vector<2x128xf32>
    %10 = tpu.matmul %7, %8, %cst_10 {dimension_numbers = #tpu.dot_dimension_numbers<[1], [0], [0], [1], [0, 0, 1, 1], [], []>} : vector<2x128xf32>, vector<128x128xf32>, vector<2x128xf32> -> vector<2x128xf32>
    %11 = vector.broadcast %9 : vector<1x128xf32> to vector<2x128xf32>
    %12 = arith.addf %10, %11 : vector<2x128xf32>
    %cst_11 = arith.constant 0.000000e+00 : f32
    %13 = vector.broadcast %cst_11 : f32 to vector<2x128xf32>
    %14 = arith.maximumf %12, %13 : vector<2x128xf32>
    %c0_12 = arith.constant 0 : index
    %c0_13 = arith.constant 0 : index
    %15 = vector.load %arg6[%c0_12, %c0_13] : memref<128x128xf32, #tpu.memory_space<vmem>>, vector<128x128xf32>
    %c0_14 = arith.constant 0 : index
    %c0_15 = arith.constant 0 : index
    %16 = vector.load %arg7[%c0_14, %c0_15] : memref<1x128xf32, #tpu.memory_space<vmem>>, vector<1x128xf32>
    %cst_16 = arith.constant dense<0.000000e+00> : vector<2x128xf32>
    %17 = tpu.matmul %14, %15, %cst_16 {dimension_numbers = #tpu.dot_dimension_numbers<[1], [0], [0], [1], [0, 0, 1, 1], [], []>} : vector<2x128xf32>, vector<128x128xf32>, vector<2x128xf32> -> vector<2x128xf32>
    %18 = vector.broadcast %16 : vector<1x128xf32> to vector<2x128xf32>
    %19 = arith.addf %17, %18 : vector<2x128xf32>
    %c0_17 = arith.constant 0 : index
    %c0_18 = arith.constant 0 : index
    %20 = vector.load %arg8[%c0_17, %c0_18] : memref<2x128xf32, #tpu.memory_space<vmem>>, vector<2x128xf32>
    tpu.vector_store %arg8[%c0_17, %c0_18], %19 {strides = array<i32>} : memref<2x128xf32, #tpu.memory_space<vmem>>, vector<2x128xf32>,
    return
  }
  func.func @transform_0(%arg0: i32) -> (i32, i32) {
    %c0_i32 = arith.constant 0 : i32
    %c0_i32_0 = arith.constant 0 : i32
    return %arg0, %c0_i32 : i32, i32
  }
  func.func @transform_1(%arg0: i32) -> (i32, i32) {
    %c0_i32 = arith.constant 0 : i32
    %c0_i32_0 = arith.constant 0 : i32
    %c0_i32_1 = arith.constant 0 : i32
    return %c0_i32, %c0_i32_0 : i32, i32
  }
  func.func @transform_2(%arg0: i32) -> (i32, i32) {
    %c0_i32 = arith.constant 0 : i32
    %c0_i32_0 = arith.constant 0 : i32
    %c0_i32_1 = arith.constant 0 : i32
    return %c0_i32, %c0_i32_0 : i32, i32
  }
  func.func @transform_3(%arg0: i32) -> (i32, i32) {
    %c0_i32 = arith.constant 0 : i32
    %c0_i32_0 = arith.constant 0 : i32
    %c0_i32_1 = arith.constant 0 : i32
    return %c0_i32, %c0_i32_0 : i32, i32
  }
  func.func @transform_4(%arg0: i32) -> (i32, i32) {
    %c0_i32 = arith.constant 0 : i32
    %c0_i32_0 = arith.constant 0 : i32
    %c0_i32_1 = arith.constant 0 : i32
    return %c0_i32, %c0_i32_0 : i32, i32
  }
  func.func @transform_5(%arg0: i32) -> (i32, i32) {
    %c0_i32 = arith.constant 0 : i32
    %c0_i32_0 = arith.constant 0 : i32
    %c0_i32_1 = arith.constant 0 : i32
    return %c0_i32, %c0_i32_0 : i32, i32
  }
  func.func @transform_6(%arg0: i32) -> (i32, i32) {
    %c0_i32 = arith.constant 0 : i32
    %c0_i32_0 = arith.constant 0 : i32
    %c0_i32_1 = arith.constant 0 : i32
    return %c0_i32, %c0_i32_0 : i32, i32
  }
  func.func @transform_7(%arg0: i32) -> (i32, i32) {
    %c0_i32 = arith.constant 0 : i32
    %c0_i32_0 = arith.constant 0 : i32
    return %arg0, %c0_i32 : i32, i32
  }
}

module attributes {stable_mosaic.version = 11 : i64} {
  func.func @_fused_mlp_kernel(%arg0: i32, %arg1: memref<2x1024xf32, #tpu.memory_space<vmem>>, %arg2: memref<1024x128xf32, #tpu.memory_space<vmem>>, %arg3: memref<1x128xf32, #tpu.memory_space<vmem>>, %arg4: memref<128x128xf32, #tpu.memory_space<vmem>>, %arg5: memref<1x128xf32, #tpu.memory_space<vmem>>, %arg6: memref<128x128xf32, #tpu.memory_space<vmem>>, %arg7: memref<1x128xf32, #tpu.memory_space<vmem>>, %arg8: memref<2x128xf32, #tpu.memory_space<vmem>>) attributes {dimension_semantics = [#tpu.dimension_semantics<parallel>], iteration_bounds = array<i64: 1>, scalar_prefetch = 0 : i64, scratch_operands = 0 : i64, tpu.core_type = #tpu.core_type<tc>, window_params = [{transform_indices = @transform_0, window_bounds = array<i64: 2, 1024>}, {pipeline_mode = #tpu.pipeline_mode<synchronous>, transform_indices = @transform_1, window_bounds = array<i64: 1024, 128>}, {pipeline_mode = #tpu.pipeline_mode<synchronous>, transform_indices = @transform_2, window_bounds = array<i64: 1, 128>}, {pipeline_mode = #tpu.pipeline_mode<synchronous>, transform_indices = @transform_3, window_bounds = array<i64: 128, 128>}, {pipeline_mode = #tpu.pipeline_mode<synchronous>, transform_indices = @transform_4, window_bounds = array<i64: 1, 128>}, {pipeline_mode = #tpu.pipeline_mode<synchronous>, transform_indices = @transform_5, window_bounds = array<i64: 128, 128>}, {pipeline_mode = #tpu.pipeline_mode<synchronous>, transform_indices = @transform_6, window_bounds = array<i64: 1, 128>}, {transform_indices = @transform_7, window_bounds = array<i64: 2, 128>}]} {
    %c0 = arith.constant 0 : index
    %c0_0 = arith.constant 0 : index
    %0 = vector.load %arg1[%c0, %c0_0] : memref<2x1024xf32, #tpu.memory_space<vmem>>, vector<2x1024xf32>
    %c0_1 = arith.constant 0 : index
    %c0_2 = arith.constant 0 : index
    %1 = vector.load %arg2[%c0_1, %c0_2] : memref<1024x128xf32, #tpu.memory_space<vmem>>, vector<1024x128xf32>
    %c0_3 = arith.constant 0 : index
    %c0_4 = arith.constant 0 : index
    %2 = vector.load %arg3[%c0_3, %c0_4] : memref<1x128xf32, #tpu.memory_space<vmem>>, vector<1x128xf32>
    %cst = arith.constant dense<0.000000e+00> : vector<2x128xf32>
    %3 = tpu.matmul %0, %1, %cst {dimension_numbers = #tpu.dot_dimension_numbers<[1], [0], [0], [1], [0, 0, 1, 1], [], []>} : vector<2x1024xf32>, vector<1024x128xf32>, vector<2x128xf32> -> vector<2x128xf32>
    %4 = vector.broadcast %2 : vector<1x128xf32> to vector<2x128xf32>
    %5 = arith.addf %3, %4 : vector<2x128xf32>
    %cst_5 = arith.constant 0.000000e+00 : f32
    %6 = vector.broadcast %cst_5 : f32 to vector<2x128xf32>
    %7 = arith.maximumf %5, %6 : vector<2x128xf32>
    %c0_6 = arith.constant 0 : index
    %c0_7 = arith.constant 0 : index
    %8 = vector.load %arg4[%c0_6, %c0_7] : memref<128x128xf32, #tpu.memory_space<vmem>>, vector<128x128xf32>
    %c0_8 = arith.constant 0 : index
    %c0_9 = arith.constant 0 : index
    %9 = vector.load %arg5[%c0_8, %c0_9] : memref<1x128xf32, #tpu.memory_space<vmem>>, vector<1x128xf32>
    %cst_10 = arith.constant dense<0.000000e+00> : vector<2x128xf32>
    %10 = tpu.matmul %7, %8, %cst_10 {dimension_numbers = #tpu.dot_dimension_numbers<[1], [0], [0], [1], [0, 0, 1, 1], [], []>} : vector<2x128xf32>, vector<128x128xf32>, vector<2x128xf32> -> vector<2x128xf32>
    %11 = vector.broadcast %9 : vector<1x128xf32> to vector<2x128xf32>
    %12 = arith.addf %10, %11 : vector<2x128xf32>
    %cst_11 = arith.constant 0.000000e+00 : f32
    %13 = vector.broadcast %cst_11 : f32 to vector<2x128xf32>
    %14 = arith.maximumf %12, %13 : vector<2x128xf32>
    %c0_12 = arith.constant 0 : index
    %c0_13 = arith.constant 0 : index
    %15 = vector.load %arg6[%c0_12, %c0_13] : memref<128x128xf32, #tpu.memory_space<vmem>>, vector<128x128xf32>
    %c0_14 = arith.constant 0 : index
    %c0_15 = arith.constant 0 : index
    %16 = vector.load %arg7[%c0_14, %c0_15] : memref<1x128xf32, #tpu.memory_space<vmem>>, vector<1x128xf32>
    %cst_16 = arith.constant dense<0.000000e+00> : vector<2x128xf32>
    %17 = tpu.matmul %14, %15, %cst_16 {dimension_numbers = #tpu.dot_dimension_numbers<[1], [0], [0], [1], [0, 0, 1, 1], [], []>} : vector<2x128xf32>, vector<128x128xf32>, vector<2x128xf32> -> vector<2x128xf32>
    %18 = vector.broadcast %16 : vector<1x128xf32> to vector<2x128xf32>
    %19 = arith.addf %17, %18 : vector<2x128xf32>
    %c0_17 = arith.constant 0 : index
    %c0_18 = arith.constant 0 : index
    %20 = vector.load %arg8[%c0_17, %c0_18] : memref<2x128xf32, #tpu.memory_space<vmem>>, vector<2x128xf32>
    tpu.vector_store %arg8[%c0_17, %c0_18], %19 {strides = array<i32>} : memref<2x128xf32, #tpu.memory_space<vmem>>, vector<2x128xf32>,
    return
  }
  func.func @transform_0(%arg0: i32) -> (i32, i32) {
    %c0_i32 = arith.constant 0 : i32
    %c0_i32_0 = arith.constant 0 : i32
    return %arg0, %c0_i32 : i32, i32
  }
  func.func @transform_1(%arg0: i32) -> (i32, i32) {
    %c0_i32 = arith.constant 0 : i32
    %c0_i32_0 = arith.constant 0 : i32
    %c0_i32_1 = arith.constant 0 : i32
    return %c0_i32, %c0_i32_0 : i32, i32
  }
  func.func @transform_2(%arg0: i32) -> (i32, i32) {
    %c0_i32 = arith.constant 0 : i32
    %c0_i32_0 = arith.constant 0 : i32
    %c0_i32_1 = arith.constant 0 : i32
    return %c0_i32, %c0_i32_0 : i32, i32
  }
  func.func @transform_3(%arg0: i32) -> (i32, i32) {
    %c0_i32 = arith.constant 0 : i32
    %c0_i32_0 = arith.constant 0 : i32
    %c0_i32_1 = arith.constant 0 : i32
    return %c0_i32, %c0_i32_0 : i32, i32
  }
  func.func @transform_4(%arg0: i32) -> (i32, i32) {
    %c0_i32 = arith.constant 0 : i32
    %c0_i32_0 = arith.constant 0 : i32
    %c0_i32_1 = arith.constant 0 : i32
    return %c0_i32, %c0_i32_0 : i32, i32
  }
  func.func @transform_5(%arg0: i32) -> (i32, i32) {
    %c0_i32 = arith.constant 0 : i32
    %c0_i32_0 = arith.constant 0 : i32
    %c0_i32_1 = arith.constant 0 : i32
    return %c0_i32, %c0_i32_0 : i32, i32
  }
  func.func @transform_6(%arg0: i32) -> (i32, i32) {
    %c0_i32 = arith.constant 0 : i32
    %c0_i32_0 = arith.constant 0 : i32
    %c0_i32_1 = arith.constant 0 : i32
    return %c0_i32, %c0_i32_0 : i32, i32
  }
  func.func @transform_7(%arg0: i32) -> (i32, i32) {
    %c0_i32 = arith.constant 0 : i32
    %c0_i32_0 = arith.constant 0 : i32
    return %arg0, %c0_i32 : i32, i32
  }
}

</mosaic_0001>

<bundles_post_ra>
// kernel: _mlp_forward_jit.1
= control target key start
LH: loop header
LB: loop body
LE: loop exit
PB: predicated region body
PF: predicated region fallthrough
CT: control target
= control target key end

     0   :  { %12 = vsyncpa [#allocation3], 0  ;;  %s678_s0 = inlined_call_operand.vmem [shape: f32[2,1024], index: 0, kind: input, shape index: {}]   ;;  %s679_s1 = inlined_call_operand.hbm [shape: f32[1024,128], index: 1, kind: input, shape index: {}]   ;;  %s680_s2 = inlined_call_operand.vmem [shape: f32[1,128], index: 2, kind: input, shape index: {}]   ;;  %s681_s3 = inlined_call_operand.vmem [shape: f32[128,128], index: 3, kind: input, shape index: {}]   ;;  %s682_s4 = inlined_call_operand.vmem [shape: f32[1,128], index: 4, kind: input, shape index: {}]   ;;  %s683_s5 = inlined_call_operand.hbm [shape: f32[128,128], index: 5, kind: input, shape index: {}]   ;;  %s684_s6 = inlined_call_operand.vmem [shape: f32[1,128], index: 6, kind: input, shape index: {}]   ;;  %s685_s7 = inlined_call_operand.hbm [shape: f32[2,128], index: 7, kind: output, shape index: {}]  }
   0x1   :  { %13 = vsyncpa [#allocation6], 0 }
   0x2   :  { %14 = vsyncpa [#allocation4], 0  ;;  %s21_s26 = sshll.u32 %s679_s1, 4  ;;  %s561_s27 = smov [#allocation2]   ;;  %s22_s26 = int_to_ptr.hbm [resolvable:$true] %s21_s26 }
   0x3   :  { %s23_s28 = sshll.u32 %s561_s27, 4  ;;  %s40_s8 = sshll.u32 %s683_s5, 4  ;;  %s24_s28 = int_to_ptr.vmem [resolvable:$true] %s23_s28  ;;  %s41_s8 = int_to_ptr.hbm [resolvable:$true] %s40_s8 }
   0x4   :  { %s562_s9 = smov 128   ;;  %s563_s10 = smov 8  }
   0x5   :  { %29 = dma.hbm_to_vmem [thread:$0]  %s22_s26, 16384, %s24_s28, [#allocation3], %s562_s9, %s562_s9, %s563_s10  }
   0x6   :  { %s564_s11 = smov [#allocation5]  }
   0x7   :  { %s42_s12 = sshll.u32 %s564_s11, 4  ;;  %s43_s12 = int_to_ptr.vmem [resolvable:$true] %s42_s12 }
   0x8   :  { %48 = dma.hbm_to_vmem [thread:$0]  %s41_s8, 2048, %s43_s12, [#allocation6], %s562_s9, %s562_s9, %s563_s10  }
   0x9   :  { %555 = dma.done.wait [#allocation3], 16384  }
   0xa   :  { %556 = vsyncadd [#allocation3], 4294950912 }
   0xb   :  { %557 = dma.done.wait [#allocation6], 2048  }
   0xc   :  { %558 = vsyncadd [#allocation6], 4294965248  ;;  %v108_v0 = vld [vmem:[#allocation2 + $0x178] sm:$0xff]  ;;  %v107_v2 = vld [vmem:[#allocation2 + $0x170] sm:$0xff]  ;;  %s565_s24 = smov [#allocation7]   ;;  %s464_s28 = sshll.u32 %s685_s7, 4  ;;  %s465_s28 = int_to_ptr.hbm [resolvable:$true] %s464_s28 }
   0xd   :  { %v76_v1 = vld [vmem:[#allocation2 + $0x78] sm:$0xff]  ;;  %254 = vmatpush.msra.mxu2 %v108_v0  ;;  %v75_v4 = vld [vmem:[#allocation2 + $0x70] sm:$0xff]  ;;  %v106_v6 = vld [vmem:[#allocation2 + $0x168] sm:$0xff]  ;;  %s462_s25 = sshll.u32 %s565_s24, 4  ;;  %s463_s25 = int_to_ptr.vmem [resolvable:$true] %s462_s25 }
   0xe   :  { %214 = vmatpush.msra.mxu0 %v76_v1  ;;  %v124_v3 = vld [vmem:[#allocation2 + $0x1f8] sm:$0xff]  ;;  %v123_v7 = vld [vmem:[#allocation2 + $0x1f0] sm:$0xff]  ;;  %v74_v8 = vld [vmem:[#allocation2 + $0x68] sm:$0xff] }
   0xf   :  { %v92_v5 = vld [vmem:[#allocation2 + $0xf8] sm:$0xff]  ;;  %274 = vmatpush.msra.mxu3 %v124_v3  ;;  %255 = vmatpush.msra.mxu2 %v107_v2  ;;  %v91_v9 = vld [vmem:[#allocation2 + $0xf0] sm:$0xff]  ;;  %v122_v10 = vld [vmem:[#allocation2 + $0x1e8] sm:$0xff] }
  0x10   :  { %234 = vmatpush.msra.mxu1 %v92_v5  ;;  %215 = vmatpush.msra.mxu0 %v75_v4  ;;  %v105_v11 = vld [vmem:[#allocation2 + $0x160] sm:$0xff]  ;;  %v90_v13 = vld [vmem:[#allocation2 + $0xe8] sm:$0xff]  ;;  %v104_v16 = vld [vmem:[#allocation2 + $0x158] sm:$0xff] }
  0x11   :  { %275 = vmatpush.msra.mxu3 %v123_v7  ;;  %v73_v12 = vld [vmem:[#allocation2 + $0x60] sm:$0xff]  ;;  %256 = vmatpush.msra.mxu2 %v106_v6  ;;  %v72_v17 = vld [vmem:[#allocation2 + $0x58] sm:$0xff]  ;;  %v103_v20 = vld [vmem:[#allocation2 + $0x150] sm:$0xff] }
  0x12   :  { %235 = vmatpush.msra.mxu1 %v91_v9  ;;  %216 = vmatpush.msra.mxu0 %v74_v8  ;;  %v121_v14 = vld [vmem:[#allocation2 + $0x1e0] sm:$0xff]  ;;  %v120_v18 = vld [vmem:[#allocation2 + $0x1d8] sm:$0xff]  ;;  %v71_v21 = vld [vmem:[#allocation2 + $0x50] sm:$0xff] }
  0x13   :  { %v89_v15 = vld [vmem:[#allocation2 + $0xe0] sm:$0xff]  ;;  %276 = vmatpush.msra.mxu3 %v122_v10  ;;  %257 = vmatpush.msra.mxu2 %v105_v11  ;;  %v88_v19 = vld [vmem:[#allocation2 + $0xd8] sm:$0xff]  ;;  %v119_v22 = vld [vmem:[#allocation2 + $0x1d0] sm:$0xff] }
  0x14   :  { %236 = vmatpush.msra.mxu1 %v90_v13  ;;  %217 = vmatpush.msra.mxu0 %v73_v12  ;;  %v87_v23 = vld [vmem:[#allocation2 + $0xd0] sm:$0xff]  ;;  %v102_v24 = vld [vmem:[#allocation2 + $0x148] sm:$0xff]  ;;  %v101_v28 = vld [vmem:[#allocation2 + $0x140] sm:$0xff] }
  0x15   :  { %277 = vmatpush.msra.mxu3 %v121_v14  ;;  %258 = vmatpush.msra.mxu2 %v104_v16  ;;  %v70_v25 = vld [vmem:[#allocation2 + $0x48] sm:$0xff]  ;;  %v69_v29 = vld [vmem:[#allocation2 + $0x40] sm:$0xff]  ;;  %v100_v32 = vld [vmem:[#allocation2 + $0x138] sm:$0xff] }
  0x16   :  { %237 = vmatpush.msra.mxu1 %v89_v15  ;;  %218 = vmatpush.msra.mxu0 %v72_v17  ;;  %v118_v26 = vld [vmem:[#allocation2 + $0x1c8] sm:$0xff]  ;;  %v117_v30 = vld [vmem:[#allocation2 + $0x1c0] sm:$0xff]  ;;  %v68_v33 = vld [vmem:[#allocation2 + $0x38] sm:$0xff] }
  0x17   :  { %278 = vmatpush.msra.mxu3 %v120_v18  ;;  %259 = vmatpush.msra.mxu2 %v103_v20  ;;  %v86_v27 = vld [vmem:[#allocation2 + $0xc8] sm:$0xff]  ;;  %v85_v31 = vld [vmem:[#allocation2 + $0xc0] sm:$0xff]  ;;  %v116_v34 = vld [vmem:[#allocation2 + $0x1b8] sm:$0xff] }
  0x18   :  { %238 = vmatpush.msra.mxu1 %v88_v19  ;;  %219 = vmatpush.msra.mxu0 %v71_v21  ;;  %v84_v35 = vld [vmem:[#allocation2 + $0xb8] sm:$0xff]  ;;  %v99_v36 = vld [vmem:[#allocation2 + $0x130] sm:$0xff]  ;;  %v98_v40 = vld [vmem:[#allocation2 + $0x128] sm:$0xff] }
  0x19   :  { %279 = vmatpush.msra.mxu3 %v119_v22  ;;  %260 = vmatpush.msra.mxu2 %v102_v24  ;;  %v67_v37 = vld [vmem:[#allocation2 + $0x30] sm:$0xff]  ;;  %v66_v41 = vld [vmem:[#allocation2 + $0x28] sm:$0xff]  ;;  %v97_v44 = vld [vmem:[#allocation2 + $0x120] sm:$0xff] }
  0x1a   :  { %239 = vmatpush.msra.mxu1 %v87_v23  ;;  %220 = vmatpush.msra.mxu0 %v70_v25  ;;  %v115_v38 = vld [vmem:[#allocation2 + $0x1b0] sm:$0xff]  ;;  %v114_v42 = vld [vmem:[#allocation2 + $0x1a8] sm:$0xff]  ;;  %v65_v45 = vld [vmem:[#allocation2 + $0x20] sm:$0xff] }
  0x1b   :  { %280 = vmatpush.msra.mxu3 %v118_v26  ;;  %261 = vmatpush.msra.mxu2 %v101_v28  ;;  %v83_v39 = vld [vmem:[#allocation2 + $0xb0] sm:$0xff]  ;;  %v82_v43 = vld [vmem:[#allocation2 + $0xa8] sm:$0xff]  ;;  %v113_v46 = vld [vmem:[#allocation2 + $0x1a0] sm:$0xff] }
  0x1c   :  { %240 = vmatpush.msra.mxu1 %v86_v27  ;;  %221 = vmatpush.msra.mxu0 %v69_v29  ;;  %v81_v47 = vld [vmem:[#allocation2 + $0xa0] sm:$0xff]  ;;  %v96_v48 = vld [vmem:[#allocation2 + $0x118] sm:$0xff]  ;;  %v95_v52 = vld [vmem:[#allocation2 + $0x110] sm:$0xff] }
  0x1d   :  { %281 = vmatpush.msra.mxu3 %v117_v30  ;;  %262 = vmatpush.msra.mxu2 %v100_v32  ;;  %v64_v49 = vld [vmem:[#allocation2 + $0x18] sm:$0xff]  ;;  %v63_v53 = vld [vmem:[#allocation2 + $0x10] sm:$0xff]  ;;  %v94_v56 = vld [vmem:[#allocation2 + $0x108] sm:$0xff] }
  0x1e   :  { %241 = vmatpush.msra.mxu1 %v85_v31  ;;  %222 = vmatpush.msra.mxu0 %v68_v33  ;;  %v112_v50 = vld [vmem:[#allocation2 + $0x198] sm:$0xff]  ;;  %v111_v54 = vld [vmem:[#allocation2 + $0x190] sm:$0xff]  ;;  %v62_v57 = vld [vmem:[#allocation2 + $0x8] sm:$0xff] }
  0x1f   :  { %282 = vmatpush.msra.mxu3 %v116_v34  ;;  %263 = vmatpush.msra.mxu2 %v99_v36  ;;  %v80_v51 = vld [vmem:[#allocation2 + $0x98] sm:$0xff]  ;;  %v79_v55 = vld [vmem:[#allocation2 + $0x90] sm:$0xff]  ;;  %v110_v58 = vld [vmem:[#allocation2 + $0x188] sm:$0xff] }
  0x20   :  { %242 = vmatpush.msra.mxu1 %v84_v35  ;;  %223 = vmatpush.msra.mxu0 %v67_v37  ;;  %v78_v59 = vld [vmem:[#allocation2 + $0x88] sm:$0xff]  ;;  %v93_v60 = vld [vmem:[#allocation2 + $0x100] sm:$0xff]  ;;  %v172_v62 = vld [vmem:[#allocation2 + $0x378] sm:$0xff] }
  0x21   :  { %283 = vmatpush.msra.mxu3 %v115_v38  ;;  %264 = vmatpush.msra.mxu2 %v98_v40  ;;  %v61_v61 = vld [vmem:[#allocation2] sm:$0xff]  ;;  %v140_v0 = vld [vmem:[#allocation2 + $0x278] sm:$0xff]  ;;  %v171_v2 = vld [vmem:[#allocation2 + $0x370] sm:$0xff] }
  0x22   :  { %243 = vmatpush.msra.mxu1 %v83_v39  ;;  %224 = vmatpush.msra.mxu0 %v66_v41  ;;  %v109_v63 = vld [vmem:[#allocation2 + $0x180] sm:$0xff]  ;;  %v188_v1 = vld [vmem:[#allocation2 + $0x3f8] sm:$0xff]  ;;  %v139_v4 = vld [vmem:[#allocation2 + $0x270] sm:$0xff] }
  0x23   :  { %284 = vmatpush.msra.mxu3 %v114_v42  ;;  %265 = vmatpush.msra.mxu2 %v97_v44  ;;  %v77_v3 = vld [vmem:[#allocation2 + $0x80] sm:$0xff]  ;;  %v156_v5 = vld [vmem:[#allocation2 + $0x2f8] sm:$0xff]  ;;  %v170_v6 = vld [vmem:[#allocation2 + $0x368] sm:$0xff] }
  0x24   :  { %244 = vmatpush.msra.mxu1 %v82_v43  ;;  %225 = vmatpush.msra.mxu0 %v65_v45  ;;  %v187_v7 = vld [vmem:[#allocation2 + $0x3f0] sm:$0xff]  ;;  %v138_v8 = vld [vmem:[#allocation2 + $0x268] sm:$0xff]  ;;  %v169_v10 = vld [vmem:[#allocation2 + $0x360] sm:$0xff] }
  0x25   :  { %285 = vmatpush.msra.mxu3 %v113_v46  ;;  %266 = vmatpush.msra.mxu2 %v96_v48  ;;  %v155_v9 = vld [vmem:[#allocation2 + $0x2f0] sm:$0xff]  ;;  %v186_v11 = vld [vmem:[#allocation2 + $0x3e8] sm:$0xff]  ;;  %v137_v12 = vld [vmem:[#allocation2 + $0x260] sm:$0xff] }
  0x26   :  { %245 = vmatpush.msra.mxu1 %v81_v47  ;;  %226 = vmatpush.msra.mxu0 %v64_v49  ;;  %v154_v13 = vld [vmem:[#allocation2 + $0x2e8] sm:$0xff]  ;;  %v59_v14 = vld [vmem:[%s678_s0] sm:$0xff]  ;;  %v185_v16 = vld [vmem:[#allocation2 + $0x3e0] sm:$0xff] }
  0x27   :  { %286 = vmatpush.msra.mxu3 %v112_v50  ;;  %267 = vmatpush.msra.mxu2 %v95_v52  ;;  %v168_v15 = vld [vmem:[#allocation2 + $0x358] sm:$0xff]  ;;  %195 = vst [vmem:[#allocation1] ss:$4 sm:$0xff] %v59_v14  ;;  %v153_v18 = vld [vmem:[#allocation2 + $0x2e0] sm:$0xff]  ;;  %v167_v19 = vld [vmem:[#allocation2 + $0x350] sm:$0xff] }
  0x28   :  { %246 = vmatpush.msra.mxu1 %v80_v51  ;;  %227 = vmatpush.msra.mxu0 %v63_v53  ;;  %v136_v17 = vld [vmem:[#allocation2 + $0x258] sm:$0xff]  ;;  %v135_v21 = vld [vmem:[#allocation2 + $0x250] sm:$0xff]  ;;  %v166_v23 = vld [vmem:[#allocation2 + $0x348] sm:$0xff] }
  0x29   :  { %287 = vmatpush.msra.mxu3 %v111_v54  ;;  %268 = vmatpush.msra.mxu2 %v94_v56  ;;  %v184_v20 = vld [vmem:[#allocation2 + $0x3d8] sm:$0xff]  ;;  %v183_v24 = vld [vmem:[#allocation2 + $0x3d0] sm:$0xff]  ;;  %v60_v25 = vld [vmem:[%s678_s0 + $0x8] sm:$0xff] }
  0x2a   :  { %247 = vmatpush.msra.mxu1 %v79_v55  ;;  %228 = vmatpush.msra.mxu0 %v62_v57  ;;  %v152_v22 = vld [vmem:[#allocation2 + $0x2d8] sm:$0xff]  ;;  %v134_v26 = vld [vmem:[#allocation2 + $0x248] sm:$0xff]  ;;  %v151_v27 = vld [vmem:[#allocation2 + $0x2d0] sm:$0xff]  ;;  %197 = vst [vmem:[#allocation1 + $0x20] ss:$4 sm:$0xff] %v60_v25 }
  0x2b   :  { %288 = vmatpush.msra.mxu3 %v110_v58  ;;  %269 = vmatpush.msra.mxu2 %v93_v60  ;;  %v165_v28 = vld [vmem:[#allocation2 + $0x340] sm:$0xff]  ;;  %v182_v29 = vld [vmem:[#allocation2 + $0x3c8] sm:$0xff]  ;;  %v164_v32 = vld [vmem:[#allocation2 + $0x338] sm:$0xff] }
  0x2c   :  { %248 = vmatpush.msra.mxu1 %v78_v59  ;;  %229 = vmatpush.msra.mxu0 %v61_v61  ;;  %v133_v30 = vld [vmem:[#allocation2 + $0x240] sm:$0xff]  ;;  %v150_v31 = vld [vmem:[#allocation2 + $0x2c8] sm:$0xff]  ;;  %v132_v34 = vld [vmem:[#allocation2 + $0x238] sm:$0xff] }
  0x2d   :  { %334 = vmatpush.msrb.mxu2 %v172_v62  ;;  %289 = vmatpush.msra.mxu3 %v109_v63  ;;  %v181_v33 = vld [vmem:[#allocation2 + $0x3c0] sm:$0xff]  ;;  %v163_v36 = vld [vmem:[#allocation2 + $0x330] sm:$0xff]  ;;  %v180_v37 = vld [vmem:[#allocation2 + $0x3b8] sm:$0xff] }
  0x2e   :  { %294 = vmatpush.msrb.mxu0 %v140_v0  ;;  %249 = vmatpush.msra.mxu1 %v77_v3  ;;  %v149_v35 = vld [vmem:[#allocation2 + $0x2c0] sm:$0xff]  ;;  %v131_v38 = vld [vmem:[#allocation2 + $0x230] sm:$0xff]  ;;  %v148_v39 = vld [vmem:[#allocation2 + $0x2b8] sm:$0xff] }
  0x2f   :  { %354 = vmatpush.msrb.mxu3 %v188_v1  ;;  %335 = vmatpush.msrb.mxu2 %v171_v2  ;;  %v162_v40 = vld [vmem:[#allocation2 + $0x328] sm:$0xff]  ;;  %v179_v41 = vld [vmem:[#allocation2 + $0x3b0] sm:$0xff]  ;;  %v161_v44 = vld [vmem:[#allocation2 + $0x320] sm:$0xff] }
  0x30   :  { %295 = vmatpush.msrb.mxu0 %v139_v4  ;;  %314 = vmatpush.msrb.mxu1 %v156_v5  ;;  %v130_v42 = vld [vmem:[#allocation2 + $0x228] sm:$0xff]  ;;  %v147_v43 = vld [vmem:[#allocation2 + $0x2b0] sm:$0xff]  ;;  %v129_v47 = vld [vmem:[#allocation2 + $0x220] sm:$0xff] }
  0x31   :  { %336 = vmatpush.msrb.mxu2 %v170_v6  ;;  %355 = vmatpush.msrb.mxu3 %v187_v7  ;;  %v178_v45 = vld [vmem:[#allocation2 + $0x3a8] sm:$0xff]  ;;  %v160_v49 = vld [vmem:[#allocation2 + $0x318] sm:$0xff]  ;;  %v177_v50 = vld [vmem:[#allocation2 + $0x3a0] sm:$0xff] }
  0x32   :  { %296 = vmatpush.msrb.mxu0 %v138_v8  ;;  %315 = vmatpush.msrb.mxu1 %v155_v9  ;;  %v200_v46 = vld.sshfl [vmem:[#allocation1 + $0x10] sm:$0xff pattern:$0x73625140]  ;;  %v198_v51 = vld.sshfl [vmem:[#allocation1] sm:$0xff pattern:$0x73625140] }
  0x33   :  { %337 = vmatpush.msrb.mxu2 %v169_v10  ;;  %356 = vmatpush.msrb.mxu3 %v186_v11  ;;  %v146_v48 = vld [vmem:[#allocation2 + $0x2a8] sm:$0xff]  ;;  %v201_v52 = vld.sshfl [vmem:[#allocation1 + $0x18] sm:$0xff pattern:$0x73625140]  ;;  %v128_v53 = vld [vmem:[#allocation2 + $0x218] sm:$0xff] }
  0x34   :  { %297 = vmatpush.msrb.mxu0 %v137_v12  ;;  %316 = vmatpush.msrb.mxu1 %v154_v13  ;;  %v145_v54 = vld [vmem:[#allocation2 + $0x2a0] sm:$0xff]  ;;  %v159_v55 = vld [vmem:[#allocation2 + $0x310] sm:$0xff]  ;;  %v176_v56 = vld [vmem:[#allocation2 + $0x398] sm:$0xff] }
  0x35   :  { %338 = vmatpush.msrb.mxu2 %v168_v15  ;;  %357 = vmatpush.msrb.mxu3 %v185_v16  ;;  %v199_v57 = vld.sshfl [vmem:[#allocation1 + $0x8] sm:$0xff pattern:$0x73625140]  ;;  %v127_v58 = vld [vmem:[#allocation2 + $0x210] sm:$0xff]  ;;  %v144_v59 = vld [vmem:[#allocation2 + $0x298] sm:$0xff] }
  0x36   :  { %298 = vmatpush.msrb.mxu0 %v136_v17  ;;  %317 = vmatpush.msrb.mxu1 %v153_v18  ;;  %v158_v60 = vld [vmem:[#allocation2 + $0x308] sm:$0xff]  ;;  %v175_v61 = vld [vmem:[#allocation2 + $0x390] sm:$0xff]  ;;  %v157_v0 = vld [vmem:[#allocation2 + $0x300] sm:$0xff] }
  0x37   :  { %339 = vmatpush.msrb.mxu2 %v167_v19  ;;  %358 = vmatpush.msrb.mxu3 %v184_v20  ;;  %v126_v62 = vld [vmem:[#allocation2 + $0x208] sm:$0xff]  ;;  %v143_v63 = vld [vmem:[#allocation2 + $0x290] sm:$0xff]  ;;  %v125_v3 = vld [vmem:[#allocation2 + $0x200] sm:$0xff] }
  0x38   :  { %299 = vmatpush.msrb.mxu0 %v135_v21  ;;  %318 = vmatpush.msrb.mxu1 %v152_v22  ;;  %v174_v1 = vld [vmem:[#allocation2 + $0x388] sm:$0xff]  ;;  %v173_v5 = vld [vmem:[#allocation2 + $0x380] sm:$0xff]  ;;  %v202_v6 = vld.sshfl [vmem:[#allocation1 + $0x20] sm:$0xff pattern:$0x73625140] }
  0x39   :  { %340 = vmatpush.msrb.mxu2 %v166_v23  ;;  %359 = vmatpush.msrb.mxu3 %v183_v24  ;;  %v204_v2 = vld.sshfl [vmem:[#allocation1 + $0x30] sm:$0xff pattern:$0x73625140]  ;;  %v205_v7 = vld.sshfl [vmem:[#allocation1 + $0x38] sm:$0xff pattern:$0x73625140] }
  0x3a   :  { %300 = vmatpush.msrb.mxu0 %v134_v26  ;;  %319 = vmatpush.msrb.mxu1 %v151_v27  ;;  %v142_v4 = vld [vmem:[#allocation2 + $0x288] sm:$0xff]  ;;  %v141_v8 = vld [vmem:[#allocation2 + $0x280] sm:$0xff]  ;;  %v390_v9 = vld [vmem:[%s681_s3 + $0x78] sm:$0xff] }
  0x3b   :  { %341 = vmatpush.msrb.mxu2 %v165_v28  ;;  %360 = vmatpush.msrb.mxu3 %v182_v29  ;;  %v203_v10 = vld.sshfl [vmem:[#allocation1 + $0x28] sm:$0xff pattern:$0x73625140]  ;;  %v389_v11 = vld [vmem:[%s681_s3 + $0x70] sm:$0xff]  ;;  %v387_v13 = vld [vmem:[%s681_s3 + $0x60] sm:$0xff] }
  0x3c   :  { %301 = vmatpush.msrb.mxu0 %v133_v30  ;;  %320 = vmatpush.msrb.mxu1 %v150_v31  ;;  %v388_v12 = vld [vmem:[%s681_s3 + $0x68] sm:$0xff]  ;;  %v386_v14 = vld [vmem:[%s681_s3 + $0x58] sm:$0xff]  ;;  %v385_v15 = vld [vmem:[%s681_s3 + $0x50] sm:$0xff] }
  0x3d   :  { %342 = vmatpush.msrb.mxu2 %v164_v32  ;;  %361 = vmatpush.msrb.mxu3 %v181_v33  ;;  %v384_v16 = vld [vmem:[%s681_s3 + $0x48] sm:$0xff]  ;;  %v383_v17 = vld [vmem:[%s681_s3 + $0x40] sm:$0xff]  ;;  %v382_v18 = vld [vmem:[%s681_s3 + $0x38] sm:$0xff] }
  0x3e   :  { %302 = vmatpush.msrb.mxu0 %v132_v34  ;;  %321 = vmatpush.msrb.mxu1 %v149_v35  ;;  %v381_v19 = vld [vmem:[%s681_s3 + $0x30] sm:$0xff]  ;;  %v380_v20 = vld [vmem:[%s681_s3 + $0x28] sm:$0xff]  ;;  %v379_v21 = vld [vmem:[%s681_s3 + $0x20] sm:$0xff] }
  0x3f   :  { %343 = vmatpush.msrb.mxu2 %v163_v36  ;;  %362 = vmatpush.msrb.mxu3 %v180_v37  ;;  %v378_v22 = vld [vmem:[%s681_s3 + $0x18] sm:$0xff]  ;;  %v377_v23 = vld [vmem:[%s681_s3 + $0x10] sm:$0xff]  ;;  %v376_v24 = vld [vmem:[%s681_s3 + $0x8] sm:$0xff] }
  0x40   :  { %303 = vmatpush.msrb.mxu0 %v131_v38  ;;  %322 = vmatpush.msrb.mxu1 %v148_v39  ;;  %v375_v25 = vld [vmem:[%s681_s3] sm:$0xff]  ;;  %v430_v27 = vld [vmem:[#allocation5 + $0x70] sm:$0xff]  ;;  %v429_v28 = vld [vmem:[#allocation5 + $0x68] sm:$0xff] }
  0x41   :  { %344 = vmatpush.msrb.mxu2 %v162_v40  ;;  %363 = vmatpush.msrb.mxu3 %v179_v41  ;;  %v431_v26 = vld [vmem:[#allocation5 + $0x78] sm:$0xff]  ;;  %v428_v29 = vld [vmem:[#allocation5 + $0x60] sm:$0xff]  ;;  %v426_v32 = vld [vmem:[#allocation5 + $0x50] sm:$0xff] }
  0x42   :  { %304 = vmatpush.msrb.mxu0 %v130_v42  ;;  %323 = vmatpush.msrb.mxu1 %v147_v43  ;;  %v427_v30 = vld [vmem:[#allocation5 + $0x58] sm:$0xff]  ;;  %v425_v33 = vld [vmem:[#allocation5 + $0x48] sm:$0xff]  ;;  %v424_v36 = vld [vmem:[#allocation5 + $0x40] sm:$0xff] }
  0x43   :  { %345 = vmatpush.msrb.mxu2 %v161_v44  ;;  %364 = vmatpush.msrb.mxu3 %v178_v45  ;;  %v480_v31 = vld [vmem:[%s680_s2] ss:$0 sm:$0xff]  ;;  %v422_v41 = vld [vmem:[#allocation5 + $0x30] sm:$0xff]  ;;  %v421_v44 = vld [vmem:[#allocation5 + $0x28] sm:$0xff] }
  0x44   :  { %270 = vmatmul.f32.vlgmr.msra.gmra.mxu2 %v200_v46  ;;  %305 = vmatpush.msrb.mxu0 %v129_v47  ;;  %v423_v38 = vld [vmem:[#allocation5 + $0x38] sm:$0xff]  ;;  %v420_v46 = vld [vmem:[#allocation5 + $0x20] sm:$0xff] }
  0x45   :  { %324 = vmatpush.msrb.mxu1 %v146_v48  ;;  %346 = vmatpush.msrb.mxu2 %v160_v49  ;;  %v419_v49 = vld [vmem:[#allocation5 + $0x18] sm:$0xff] }
  0x46   :  { %365 = vmatpush.msrb.mxu3 %v177_v50  ;;  %230 = vmatmul.f32.vlgmr.msra.gmra.mxu0 %v198_v51 }
  0x47   :  { %290 = vmatmul.f32.vlgmr.msra.gmra.mxu3 %v201_v52  ;;  %306 = vmatpush.msrb.mxu0 %v128_v53 }
  0x48   :  { %325 = vmatpush.msrb.mxu1 %v145_v54  ;;  %347 = vmatpush.msrb.mxu2 %v159_v55 }
  0x49   :  { %366 = vmatpush.msrb.mxu3 %v176_v56  ;;  %250 = vmatmul.f32.vlgmr.msra.gmra.mxu1 %v199_v57  ;;  %v418_v57 = vld [vmem:[#allocation5 + $0x10] sm:$0xff] }
  0x4a   :  { %307 = vmatpush.msrb.mxu0 %v127_v58  ;;  %326 = vmatpush.msrb.mxu1 %v144_v59  ;;  %v417_v58 = vld [vmem:[#allocation5 + $0x8] sm:$0xff]  ;;  %v416_v59 = vld [vmem:[#allocation5] sm:$0xff] }
  0x4b   :  { %348 = vmatpush.msrb.mxu2 %v158_v60  ;;  %367 = vmatpush.msrb.mxu3 %v175_v61  ;;  %v481_v60 = vld [vmem:[%s682_s4] ss:$0 sm:$0xff] }
  0x4c   :  { %308 = vmatpush.msrb.mxu0 %v126_v62  ;;  %327 = vmatpush.msrb.mxu1 %v143_v63 }
  0x4d   :  { %349 = vmatpush.msrb.mxu2 %v157_v0  ;;  %368 = vmatpush.msrb.mxu3 %v174_v1  ;;  %v482_v0 = vld [vmem:[%s684_s6] ss:$0 sm:$0xff] }
  0x4e   :  { %350 = vmatmul.f32.vlgmr.msrb.gmra.mxu2 %v204_v2  ;;  %309 = vmatpush.msrb.mxu0 %v125_v3 }
  0x4f   :  { %328 = vmatpush.msrb.mxu1 %v142_v4  ;;  %369 = vmatpush.msrb.mxu3 %v173_v5 }
  0x50   :  { %310 = vmatmul.f32.vlgmr.msrb.gmra.mxu0 %v202_v6  ;;  %370 = vmatmul.f32.vlgmr.msrb.gmra.mxu3 %v205_v7 }
  0x51   :  { %329 = vmatpush.msrb.mxu1 %v141_v8  ;;  %395 = vmatpush.msra.mxu0 %v390_v9 }
  0x52   :  { %330 = vmatmul.f32.vlgmr.msrb.gmra.mxu1 %v203_v10 }
  0x53   :  { %396 = vmatpush.msra.mxu0 %v389_v11  ;;  %436 = vmatpush.msra.mxu1 %v431_v26 }
  0x55   :  { %397 = vmatpush.msra.mxu0 %v388_v12  ;;  %437 = vmatpush.msra.mxu1 %v430_v27 }
  0x57   :  { %398 = vmatpush.msra.mxu0 %v387_v13  ;;  %438 = vmatpush.msra.mxu1 %v429_v28 }
  0x59   :  { %399 = vmatpush.msra.mxu0 %v386_v14  ;;  %439 = vmatpush.msra.mxu1 %v428_v29 }
  0x5b   :  { %400 = vmatpush.msra.mxu0 %v385_v15  ;;  %440 = vmatpush.msra.mxu1 %v427_v30 }
  0x5d   :  { %401 = vmatpush.msra.mxu0 %v384_v16  ;;  %441 = vmatpush.msra.mxu1 %v426_v32 }
  0x5f   :  { %402 = vmatpush.msra.mxu0 %v383_v17  ;;  %442 = vmatpush.msra.mxu1 %v425_v33 }
  0x61   :  { %403 = vmatpush.msra.mxu0 %v382_v18  ;;  %443 = vmatpush.msra.mxu1 %v424_v36 }
  0x63   :  { %404 = vmatpush.msra.mxu0 %v381_v19  ;;  %444 = vmatpush.msra.mxu1 %v423_v38 }
  0x65   :  { %405 = vmatpush.msra.mxu0 %v380_v20  ;;  %445 = vmatpush.msra.mxu1 %v422_v41 }
  0x67   :  { %406 = vmatpush.msra.mxu0 %v379_v21  ;;  %446 = vmatpush.msra.mxu1 %v421_v44 }
  0x69   :  { %407 = vmatpush.msra.mxu0 %v378_v22  ;;  %447 = vmatpush.msra.mxu1 %v420_v46 }
  0x6b   :  { %408 = vmatpush.msra.mxu0 %v377_v23  ;;  %448 = vmatpush.msra.mxu1 %v419_v49 }
  0x6d   :  { %409 = vmatpush.msra.mxu0 %v376_v24  ;;  %449 = vmatpush.msra.mxu1 %v418_v57 }
  0x6f   :  { %410 = vmatpush.msra.mxu0 %v375_v25  ;;  %450 = vmatpush.msra.mxu1 %v417_v58 }
  0x71   :  { %451 = vmatpush.msra.mxu1 %v416_v59 }
  0xc3   :  { %v231_v34 = vpop.f32.mrf.mxu0 }
  0xc4   :  { %v232_v35 = vadd.f32 %v480_v31, %v231_v34 }
  0xc6   :  { %v251_v37 = vpop.f32.mrf.mxu1 }
  0xc7   :  { %v252_v39 = vadd.f32 %v251_v37, %v232_v35  ;;  %v271_v40 = vpop.f32.mrf.mxu2 }
  0xc9   :  { %v272_v42 = vadd.f32 %v271_v40, %v252_v39 }
  0xca   :  { %v291_v43 = vpop.f32.mrf.mxu3 }
  0xcb   :  { %v292_v45 = vadd.f32 %v291_v43, %v272_v42 }
  0xcd   :  { %v311_v47 = vpop.f32.mrf.mxu0 }
  0xce   :  { %v312_v48 = vadd.f32 %v311_v47, %v292_v45 }
  0xcf   :  { %v331_v50 = vpop.f32.mrf.mxu1 }
  0xd0   :  { %v332_v51 = vadd.f32 %v331_v50, %v312_v48 }
  0xd1   :  { %v351_v52 = vpop.f32.mrf.mxu2 }
  0xd2   :  { %v352_v53 = vadd.f32 %v351_v52, %v332_v51 }
  0xd3   :  { %v371_v54 = vpop.f32.mrf.mxu3 }
  0xd4   :  { %v372_v55 = vadd.f32 %v371_v54, %v352_v53 }
  0xd6   :  { %v374_v56 = vmax.f32 %v372_v55, 0.0 }
  0xd8   :  { %411 = vmatmul.f32.vlgmr.msra.gmra.mxu0 %v374_v56 }
 0x155   :  { %v412_v61 = vpop.f32.mrf.mxu0 }
 0x156   :  { %v413_v62 = vadd.f32 %v481_v60, %v412_v61 }
 0x158   :  { %v415_v63 = vmax.f32 %v413_v62, 0.0 }
 0x15a   :  { %452 = vmatmul.f32.vlgmr.msra.gmra.mxu1 %v415_v63 }
 0x1d7   :  { %v453_v1 = vpop.f32.mrf.mxu1 }
 0x1d8   :  { %v454_v2 = vadd.f32 %v482_v0, %v453_v1 }
 0x1da   :  { %456 = vst [vmem:[#allocation7] sm:$0x3] %v454_v2 }
 0x1db   :  { %467 = dma.vmem_to_hbm [thread:$0]  %s463_s25, 32, %s465_s28, [#allocation4]  }
 0x1dc   :  { %559 = dma.done.wait [#allocation4], 32  }
 0x1dd   :  { %560 = vsyncadd [#allocation4], 4294967264 }
 0x1de   :  { %472 = vsyncpa [#allocation3], 1 }
 0x1df   :  { %473 = vsyncpa [#allocation6], 1 }
 0x1e0   :  { %474 = vsyncpa [#allocation4], 1 }

// kernel: _mlp_forward_jit.1
= control target key start
LH: loop header
LB: loop body
LE: loop exit
PB: predicated region body
PF: predicated region fallthrough
CT: control target
= control target key end

     0   :  { %12 = vsyncpa [#allocation3], 0  ;;  %s678_s0 = inlined_call_operand.vmem [shape: f32[2,1024], index: 0, kind: input, shape index: {}]   ;;  %s679_s1 = inlined_call_operand.hbm [shape: f32[1024,128], index: 1, kind: input, shape index: {}]   ;;  %s680_s2 = inlined_call_operand.vmem [shape: f32[1,128], index: 2, kind: input, shape index: {}]   ;;  %s681_s3 = inlined_call_operand.vmem [shape: f32[128,128], index: 3, kind: input, shape index: {}]   ;;  %s682_s4 = inlined_call_operand.vmem [shape: f32[1,128], index: 4, kind: input, shape index: {}]   ;;  %s683_s5 = inlined_call_operand.hbm [shape: f32[128,128], index: 5, kind: input, shape index: {}]   ;;  %s684_s6 = inlined_call_operand.vmem [shape: f32[1,128], index: 6, kind: input, shape index: {}]   ;;  %s685_s7 = inlined_call_operand.hbm [shape: f32[2,128], index: 7, kind: output, shape index: {}]  }
   0x1   :  { %13 = vsyncpa [#allocation6], 0 }
   0x2   :  { %14 = vsyncpa [#allocation4], 0  ;;  %s21_s26 = sshll.u32 %s679_s1, 4  ;;  %s561_s27 = smov [#allocation2]   ;;  %s22_s26 = int_to_ptr.hbm [resolvable:$true] %s21_s26 }
   0x3   :  { %s23_s28 = sshll.u32 %s561_s27, 4  ;;  %s40_s8 = sshll.u32 %s683_s5, 4  ;;  %s24_s28 = int_to_ptr.vmem [resolvable:$true] %s23_s28  ;;  %s41_s8 = int_to_ptr.hbm [resolvable:$true] %s40_s8 }
   0x4   :  { %s562_s9 = smov 128   ;;  %s563_s10 = smov 8  }
   0x5   :  { %29 = dma.hbm_to_vmem [thread:$0]  %s22_s26, 16384, %s24_s28, [#allocation3], %s562_s9, %s562_s9, %s563_s10  }
   0x6   :  { %s564_s11 = smov [#allocation5]  }
   0x7   :  { %s42_s12 = sshll.u32 %s564_s11, 4  ;;  %s43_s12 = int_to_ptr.vmem [resolvable:$true] %s42_s12 }
   0x8   :  { %48 = dma.hbm_to_vmem [thread:$0]  %s41_s8, 2048, %s43_s12, [#allocation6], %s562_s9, %s562_s9, %s563_s10  }
   0x9   :  { %555 = dma.done.wait [#allocation3], 16384  }
   0xa   :  { %556 = vsyncadd [#allocation3], 4294950912 }
   0xb   :  { %557 = dma.done.wait [#allocation6], 2048  }
   0xc   :  { %558 = vsyncadd [#allocation6], 4294965248  ;;  %v108_v0 = vld [vmem:[#allocation2 + $0x178] sm:$0xff]  ;;  %v107_v2 = vld [vmem:[#allocation2 + $0x170] sm:$0xff]  ;;  %s565_s24 = smov [#allocation7]   ;;  %s464_s28 = sshll.u32 %s685_s7, 4  ;;  %s465_s28 = int_to_ptr.hbm [resolvable:$true] %s464_s28 }
   0xd   :  { %v76_v1 = vld [vmem:[#allocation2 + $0x78] sm:$0xff]  ;;  %254 = vmatpush.msra.mxu2 %v108_v0  ;;  %v75_v4 = vld [vmem:[#allocation2 + $0x70] sm:$0xff]  ;;  %v106_v6 = vld [vmem:[#allocation2 + $0x168] sm:$0xff]  ;;  %s462_s25 = sshll.u32 %s565_s24, 4  ;;  %s463_s25 = int_to_ptr.vmem [resolvable:$true] %s462_s25 }
   0xe   :  { %214 = vmatpush.msra.mxu0 %v76_v1  ;;  %v124_v3 = vld [vmem:[#allocation2 + $0x1f8] sm:$0xff]  ;;  %v123_v7 = vld [vmem:[#allocation2 + $0x1f0] sm:$0xff]  ;;  %v74_v8 = vld [vmem:[#allocation2 + $0x68] sm:$0xff] }
   0xf   :  { %v92_v5 = vld [vmem:[#allocation2 + $0xf8] sm:$0xff]  ;;  %274 = vmatpush.msra.mxu3 %v124_v3  ;;  %255 = vmatpush.msra.mxu2 %v107_v2  ;;  %v91_v9 = vld [vmem:[#allocation2 + $0xf0] sm:$0xff]  ;;  %v122_v10 = vld [vmem:[#allocation2 + $0x1e8] sm:$0xff] }
  0x10   :  { %234 = vmatpush.msra.mxu1 %v92_v5  ;;  %215 = vmatpush.msra.mxu0 %v75_v4  ;;  %v105_v11 = vld [vmem:[#allocation2 + $0x160] sm:$0xff]  ;;  %v90_v13 = vld [vmem:[#allocation2 + $0xe8] sm:$0xff]  ;;  %v104_v16 = vld [vmem:[#allocation2 + $0x158] sm:$0xff] }
  0x11   :  { %275 = vmatpush.msra.mxu3 %v123_v7  ;;  %v73_v12 = vld [vmem:[#allocation2 + $0x60] sm:$0xff]  ;;  %256 = vmatpush.msra.mxu2 %v106_v6  ;;  %v72_v17 = vld [vmem:[#allocation2 + $0x58] sm:$0xff]  ;;  %v103_v20 = vld [vmem:[#allocation2 + $0x150] sm:$0xff] }
  0x12   :  { %235 = vmatpush.msra.mxu1 %v91_v9  ;;  %216 = vmatpush.msra.mxu0 %v74_v8  ;;  %v121_v14 = vld [vmem:[#allocation2 + $0x1e0] sm:$0xff]  ;;  %v120_v18 = vld [vmem:[#allocation2 + $0x1d8] sm:$0xff]  ;;  %v71_v21 = vld [vmem:[#allocation2 + $0x50] sm:$0xff] }
  0x13   :  { %v89_v15 = vld [vmem:[#allocation2 + $0xe0] sm:$0xff]  ;;  %276 = vmatpush.msra.mxu3 %v122_v10  ;;  %257 = vmatpush.msra.mxu2 %v105_v11  ;;  %v88_v19 = vld [vmem:[#allocation2 + $0xd8] sm:$0xff]  ;;  %v119_v22 = vld [vmem:[#allocation2 + $0x1d0] sm:$0xff] }
  0x14   :  { %236 = vmatpush.msra.mxu1 %v90_v13  ;;  %217 = vmatpush.msra.mxu0 %v73_v12  ;;  %v87_v23 = vld [vmem:[#allocation2 + $0xd0] sm:$0xff]  ;;  %v102_v24 = vld [vmem:[#allocation2 + $0x148] sm:$0xff]  ;;  %v101_v28 = vld [vmem:[#allocation2 + $0x140] sm:$0xff] }
  0x15   :  { %277 = vmatpush.msra.mxu3 %v121_v14  ;;  %258 = vmatpush.msra.mxu2 %v104_v16  ;;  %v70_v25 = vld [vmem:[#allocation2 + $0x48] sm:$0xff]  ;;  %v69_v29 = vld [vmem:[#allocation2 + $0x40] sm:$0xff]  ;;  %v100_v32 = vld [vmem:[#allocation2 + $0x138] sm:$0xff] }
  0x16   :  { %237 = vmatpush.msra.mxu1 %v89_v15  ;;  %218 = vmatpush.msra.mxu0 %v72_v17  ;;  %v118_v26 = vld [vmem:[#allocation2 + $0x1c8] sm:$0xff]  ;;  %v117_v30 = vld [vmem:[#allocation2 + $0x1c0] sm:$0xff]  ;;  %v68_v33 = vld [vmem:[#allocation2 + $0x38] sm:$0xff] }
  0x17   :  { %278 = vmatpush.msra.mxu3 %v120_v18  ;;  %259 = vmatpush.msra.mxu2 %v103_v20  ;;  %v86_v27 = vld [vmem:[#allocation2 + $0xc8] sm:$0xff]  ;;  %v85_v31 = vld [vmem:[#allocation2 + $0xc0] sm:$0xff]  ;;  %v116_v34 = vld [vmem:[#allocation2 + $0x1b8] sm:$0xff] }
  0x18   :  { %238 = vmatpush.msra.mxu1 %v88_v19  ;;  %219 = vmatpush.msra.mxu0 %v71_v21  ;;  %v84_v35 = vld [vmem:[#allocation2 + $0xb8] sm:$0xff]  ;;  %v99_v36 = vld [vmem:[#allocation2 + $0x130] sm:$0xff]  ;;  %v98_v40 = vld [vmem:[#allocation2 + $0x128] sm:$0xff] }
  0x19   :  { %279 = vmatpush.msra.mxu3 %v119_v22  ;;  %260 = vmatpush.msra.mxu2 %v102_v24  ;;  %v67_v37 = vld [vmem:[#allocation2 + $0x30] sm:$0xff]  ;;  %v66_v41 = vld [vmem:[#allocation2 + $0x28] sm:$0xff]  ;;  %v97_v44 = vld [vmem:[#allocation2 + $0x120] sm:$0xff] }
  0x1a   :  { %239 = vmatpush.msra.mxu1 %v87_v23  ;;  %220 = vmatpush.msra.mxu0 %v70_v25  ;;  %v115_v38 = vld [vmem:[#allocation2 + $0x1b0] sm:$0xff]  ;;  %v114_v42 = vld [vmem:[#allocation2 + $0x1a8] sm:$0xff]  ;;  %v65_v45 = vld [vmem:[#allocation2 + $0x20] sm:$0xff] }
  0x1b   :  { %280 = vmatpush.msra.mxu3 %v118_v26  ;;  %261 = vmatpush.msra.mxu2 %v101_v28  ;;  %v83_v39 = vld [vmem:[#allocation2 + $0xb0] sm:$0xff]  ;;  %v82_v43 = vld [vmem:[#allocation2 + $0xa8] sm:$0xff]  ;;  %v113_v46 = vld [vmem:[#allocation2 + $0x1a0] sm:$0xff] }
  0x1c   :  { %240 = vmatpush.msra.mxu1 %v86_v27  ;;  %221 = vmatpush.msra.mxu0 %v69_v29  ;;  %v81_v47 = vld [vmem:[#allocation2 + $0xa0] sm:$0xff]  ;;  %v96_v48 = vld [vmem:[#allocation2 + $0x118] sm:$0xff]  ;;  %v95_v52 = vld [vmem:[#allocation2 + $0x110] sm:$0xff] }
  0x1d   :  { %281 = vmatpush.msra.mxu3 %v117_v30  ;;  %262 = vmatpush.msra.mxu2 %v100_v32  ;;  %v64_v49 = vld [vmem:[#allocation2 + $0x18] sm:$0xff]  ;;  %v63_v53 = vld [vmem:[#allocation2 + $0x10] sm:$0xff]  ;;  %v94_v56 = vld [vmem:[#allocation2 + $0x108] sm:$0xff] }
  0x1e   :  { %241 = vmatpush.msra.mxu1 %v85_v31  ;;  %222 = vmatpush.msra.mxu0 %v68_v33  ;;  %v112_v50 = vld [vmem:[#allocation2 + $0x198] sm:$0xff]  ;;  %v111_v54 = vld [vmem:[#allocation2 + $0x190] sm:$0xff]  ;;  %v62_v57 = vld [vmem:[#allocation2 + $0x8] sm:$0xff] }
  0x1f   :  { %282 = vmatpush.msra.mxu3 %v116_v34  ;;  %263 = vmatpush.msra.mxu2 %v99_v36  ;;  %v80_v51 = vld [vmem:[#allocation2 + $0x98] sm:$0xff]  ;;  %v79_v55 = vld [vmem:[#allocation2 + $0x90] sm:$0xff]  ;;  %v110_v58 = vld [vmem:[#allocation2 + $0x188] sm:$0xff] }
  0x20   :  { %242 = vmatpush.msra.mxu1 %v84_v35  ;;  %223 = vmatpush.msra.mxu0 %v67_v37  ;;  %v78_v59 = vld [vmem:[#allocation2 + $0x88] sm:$0xff]  ;;  %v93_v60 = vld [vmem:[#allocation2 + $0x100] sm:$0xff]  ;;  %v172_v62 = vld [vmem:[#allocation2 + $0x378] sm:$0xff] }
  0x21   :  { %283 = vmatpush.msra.mxu3 %v115_v38  ;;  %264 = vmatpush.msra.mxu2 %v98_v40  ;;  %v61_v61 = vld [vmem:[#allocation2] sm:$0xff]  ;;  %v140_v0 = vld [vmem:[#allocation2 + $0x278] sm:$0xff]  ;;  %v171_v2 = vld [vmem:[#allocation2 + $0x370] sm:$0xff] }
  0x22   :  { %243 = vmatpush.msra.mxu1 %v83_v39  ;;  %224 = vmatpush.msra.mxu0 %v66_v41  ;;  %v109_v63 = vld [vmem:[#allocation2 + $0x180] sm:$0xff]  ;;  %v188_v1 = vld [vmem:[#allocation2 + $0x3f8] sm:$0xff]  ;;  %v139_v4 = vld [vmem:[#allocation2 + $0x270] sm:$0xff] }
  0x23   :  { %284 = vmatpush.msra.mxu3 %v114_v42  ;;  %265 = vmatpush.msra.mxu2 %v97_v44  ;;  %v77_v3 = vld [vmem:[#allocation2 + $0x80] sm:$0xff]  ;;  %v156_v5 = vld [vmem:[#allocation2 + $0x2f8] sm:$0xff]  ;;  %v170_v6 = vld [vmem:[#allocation2 + $0x368] sm:$0xff] }
  0x24   :  { %244 = vmatpush.msra.mxu1 %v82_v43  ;;  %225 = vmatpush.msra.mxu0 %v65_v45  ;;  %v187_v7 = vld [vmem:[#allocation2 + $0x3f0] sm:$0xff]  ;;  %v138_v8 = vld [vmem:[#allocation2 + $0x268] sm:$0xff]  ;;  %v169_v10 = vld [vmem:[#allocation2 + $0x360] sm:$0xff] }
  0x25   :  { %285 = vmatpush.msra.mxu3 %v113_v46  ;;  %266 = vmatpush.msra.mxu2 %v96_v48  ;;  %v155_v9 = vld [vmem:[#allocation2 + $0x2f0] sm:$0xff]  ;;  %v186_v11 = vld [vmem:[#allocation2 + $0x3e8] sm:$0xff]  ;;  %v137_v12 = vld [vmem:[#allocation2 + $0x260] sm:$0xff] }
  0x26   :  { %245 = vmatpush.msra.mxu1 %v81_v47  ;;  %226 = vmatpush.msra.mxu0 %v64_v49  ;;  %v154_v13 = vld [vmem:[#allocation2 + $0x2e8] sm:$0xff]  ;;  %v59_v14 = vld [vmem:[%s678_s0] sm:$0xff]  ;;  %v185_v16 = vld [vmem:[#allocation2 + $0x3e0] sm:$0xff] }
  0x27   :  { %286 = vmatpush.msra.mxu3 %v112_v50  ;;  %267 = vmatpush.msra.mxu2 %v95_v52  ;;  %v168_v15 = vld [vmem:[#allocation2 + $0x358] sm:$0xff]  ;;  %195 = vst [vmem:[#allocation1] ss:$4 sm:$0xff] %v59_v14  ;;  %v153_v18 = vld [vmem:[#allocation2 + $0x2e0] sm:$0xff]  ;;  %v167_v19 = vld [vmem:[#allocation2 + $0x350] sm:$0xff] }
  0x28   :  { %246 = vmatpush.msra.mxu1 %v80_v51  ;;  %227 = vmatpush.msra.mxu0 %v63_v53  ;;  %v136_v17 = vld [vmem:[#allocation2 + $0x258] sm:$0xff]  ;;  %v135_v21 = vld [vmem:[#allocation2 + $0x250] sm:$0xff]  ;;  %v166_v23 = vld [vmem:[#allocation2 + $0x348] sm:$0xff] }
  0x29   :  { %287 = vmatpush.msra.mxu3 %v111_v54  ;;  %268 = vmatpush.msra.mxu2 %v94_v56  ;;  %v184_v20 = vld [vmem:[#allocation2 + $0x3d8] sm:$0xff]  ;;  %v183_v24 = vld [vmem:[#allocation2 + $0x3d0] sm:$0xff]  ;;  %v60_v25 = vld [vmem:[%s678_s0 + $0x8] sm:$0xff] }
  0x2a   :  { %247 = vmatpush.msra.mxu1 %v79_v55  ;;  %228 = vmatpush.msra.mxu0 %v62_v57  ;;  %v152_v22 = vld [vmem:[#allocation2 + $0x2d8] sm:$0xff]  ;;  %v134_v26 = vld [vmem:[#allocation2 + $0x248] sm:$0xff]  ;;  %v151_v27 = vld [vmem:[#allocation2 + $0x2d0] sm:$0xff]  ;;  %197 = vst [vmem:[#allocation1 + $0x20] ss:$4 sm:$0xff] %v60_v25 }
  0x2b   :  { %288 = vmatpush.msra.mxu3 %v110_v58  ;;  %269 = vmatpush.msra.mxu2 %v93_v60  ;;  %v165_v28 = vld [vmem:[#allocation2 + $0x340] sm:$0xff]  ;;  %v182_v29 = vld [vmem:[#allocation2 + $0x3c8] sm:$0xff]  ;;  %v164_v32 = vld [vmem:[#allocation2 + $0x338] sm:$0xff] }
  0x2c   :  { %248 = vmatpush.msra.mxu1 %v78_v59  ;;  %229 = vmatpush.msra.mxu0 %v61_v61  ;;  %v133_v30 = vld [vmem:[#allocation2 + $0x240] sm:$0xff]  ;;  %v150_v31 = vld [vmem:[#allocation2 + $0x2c8] sm:$0xff]  ;;  %v132_v34 = vld [vmem:[#allocation2 + $0x238] sm:$0xff] }
  0x2d   :  { %334 = vmatpush.msrb.mxu2 %v172_v62  ;;  %289 = vmatpush.msra.mxu3 %v109_v63  ;;  %v181_v33 = vld [vmem:[#allocation2 + $0x3c0] sm:$0xff]  ;;  %v163_v36 = vld [vmem:[#allocation2 + $0x330] sm:$0xff]  ;;  %v180_v37 = vld [vmem:[#allocation2 + $0x3b8] sm:$0xff] }
  0x2e   :  { %294 = vmatpush.msrb.mxu0 %v140_v0  ;;  %249 = vmatpush.msra.mxu1 %v77_v3  ;;  %v149_v35 = vld [vmem:[#allocation2 + $0x2c0] sm:$0xff]  ;;  %v131_v38 = vld [vmem:[#allocation2 + $0x230] sm:$0xff]  ;;  %v148_v39 = vld [vmem:[#allocation2 + $0x2b8] sm:$0xff] }
  0x2f   :  { %354 = vmatpush.msrb.mxu3 %v188_v1  ;;  %335 = vmatpush.msrb.mxu2 %v171_v2  ;;  %v162_v40 = vld [vmem:[#allocation2 + $0x328] sm:$0xff]  ;;  %v179_v41 = vld [vmem:[#allocation2 + $0x3b0] sm:$0xff]  ;;  %v161_v44 = vld [vmem:[#allocation2 + $0x320] sm:$0xff] }
  0x30   :  { %295 = vmatpush.msrb.mxu0 %v139_v4  ;;  %314 = vmatpush.msrb.mxu1 %v156_v5  ;;  %v130_v42 = vld [vmem:[#allocation2 + $0x228] sm:$0xff]  ;;  %v147_v43 = vld [vmem:[#allocation2 + $0x2b0] sm:$0xff]  ;;  %v129_v47 = vld [vmem:[#allocation2 + $0x220] sm:$0xff] }
  0x31   :  { %336 = vmatpush.msrb.mxu2 %v170_v6  ;;  %355 = vmatpush.msrb.mxu3 %v187_v7  ;;  %v178_v45 = vld [vmem:[#allocation2 + $0x3a8] sm:$0xff]  ;;  %v160_v49 = vld [vmem:[#allocation2 + $0x318] sm:$0xff]  ;;  %v177_v50 = vld [vmem:[#allocation2 + $0x3a0] sm:$0xff] }
  0x32   :  { %296 = vmatpush.msrb.mxu0 %v138_v8  ;;  %315 = vmatpush.msrb.mxu1 %v155_v9  ;;  %v200_v46 = vld.sshfl [vmem:[#allocation1 + $0x10] sm:$0xff pattern:$0x73625140]  ;;  %v198_v51 = vld.sshfl [vmem:[#allocation1] sm:$0xff pattern:$0x73625140] }
  0x33   :  { %337 = vmatpush.msrb.mxu2 %v169_v10  ;;  %356 = vmatpush.msrb.mxu3 %v186_v11  ;;  %v146_v48 = vld [vmem:[#allocation2 + $0x2a8] sm:$0xff]  ;;  %v201_v52 = vld.sshfl [vmem:[#allocation1 + $0x18] sm:$0xff pattern:$0x73625140]  ;;  %v128_v53 = vld [vmem:[#allocation2 + $0x218] sm:$0xff] }
  0x34   :  { %297 = vmatpush.msrb.mxu0 %v137_v12  ;;  %316 = vmatpush.msrb.mxu1 %v154_v13  ;;  %v145_v54 = vld [vmem:[#allocation2 + $0x2a0] sm:$0xff]  ;;  %v159_v55 = vld [vmem:[#allocation2 + $0x310] sm:$0xff]  ;;  %v176_v56 = vld [vmem:[#allocation2 + $0x398] sm:$0xff] }
  0x35   :  { %338 = vmatpush.msrb.mxu2 %v168_v15  ;;  %357 = vmatpush.msrb.mxu3 %v185_v16  ;;  %v199_v57 = vld.sshfl [vmem:[#allocation1 + $0x8] sm:$0xff pattern:$0x73625140]  ;;  %v127_v58 = vld [vmem:[#allocation2 + $0x210] sm:$0xff]  ;;  %v144_v59 = vld [vmem:[#allocation2 + $0x298] sm:$0xff] }
  0x36   :  { %298 = vmatpush.msrb.mxu0 %v136_v17  ;;  %317 = vmatpush.msrb.mxu1 %v153_v18  ;;  %v158_v60 = vld [vmem:[#allocation2 + $0x308] sm:$0xff]  ;;  %v175_v61 = vld [vmem:[#allocation2 + $0x390] sm:$0xff]  ;;  %v157_v0 = vld [vmem:[#allocation2 + $0x300] sm:$0xff] }
  0x37   :  { %339 = vmatpush.msrb.mxu2 %v167_v19  ;;  %358 = vmatpush.msrb.mxu3 %v184_v20  ;;  %v126_v62 = vld [vmem:[#allocation2 + $0x208] sm:$0xff]  ;;  %v143_v63 = vld [vmem:[#allocation2 + $0x290] sm:$0xff]  ;;  %v125_v3 = vld [vmem:[#allocation2 + $0x200] sm:$0xff] }
  0x38   :  { %299 = vmatpush.msrb.mxu0 %v135_v21  ;;  %318 = vmatpush.msrb.mxu1 %v152_v22  ;;  %v174_v1 = vld [vmem:[#allocation2 + $0x388] sm:$0xff]  ;;  %v173_v5 = vld [vmem:[#allocation2 + $0x380] sm:$0xff]  ;;  %v202_v6 = vld.sshfl [vmem:[#allocation1 + $0x20] sm:$0xff pattern:$0x73625140] }
  0x39   :  { %340 = vmatpush.msrb.mxu2 %v166_v23  ;;  %359 = vmatpush.msrb.mxu3 %v183_v24  ;;  %v204_v2 = vld.sshfl [vmem:[#allocation1 + $0x30] sm:$0xff pattern:$0x73625140]  ;;  %v205_v7 = vld.sshfl [vmem:[#allocation1 + $0x38] sm:$0xff pattern:$0x73625140] }
  0x3a   :  { %300 = vmatpush.msrb.mxu0 %v134_v26  ;;  %319 = vmatpush.msrb.mxu1 %v151_v27  ;;  %v142_v4 = vld [vmem:[#allocation2 + $0x288] sm:$0xff]  ;;  %v141_v8 = vld [vmem:[#allocation2 + $0x280] sm:$0xff]  ;;  %v390_v9 = vld [vmem:[%s681_s3 + $0x78] sm:$0xff] }
  0x3b   :  { %341 = vmatpush.msrb.mxu2 %v165_v28  ;;  %360 = vmatpush.msrb.mxu3 %v182_v29  ;;  %v203_v10 = vld.sshfl [vmem:[#allocation1 + $0x28] sm:$0xff pattern:$0x73625140]  ;;  %v389_v11 = vld [vmem:[%s681_s3 + $0x70] sm:$0xff]  ;;  %v387_v13 = vld [vmem:[%s681_s3 + $0x60] sm:$0xff] }
  0x3c   :  { %301 = vmatpush.msrb.mxu0 %v133_v30  ;;  %320 = vmatpush.msrb.mxu1 %v150_v31  ;;  %v388_v12 = vld [vmem:[%s681_s3 + $0x68] sm:$0xff]  ;;  %v386_v14 = vld [vmem:[%s681_s3 + $0x58] sm:$0xff]  ;;  %v385_v15 = vld [vmem:[%s681_s3 + $0x50] sm:$0xff] }
  0x3d   :  { %342 = vmatpush.msrb.mxu2 %v164_v32  ;;  %361 = vmatpush.msrb.mxu3 %v181_v33  ;;  %v384_v16 = vld [vmem:[%s681_s3 + $0x48] sm:$0xff]  ;;  %v383_v17 = vld [vmem:[%s681_s3 + $0x40] sm:$0xff]  ;;  %v382_v18 = vld [vmem:[%s681_s3 + $0x38] sm:$0xff] }
  0x3e   :  { %302 = vmatpush.msrb.mxu0 %v132_v34  ;;  %321 = vmatpush.msrb.mxu1 %v149_v35  ;;  %v381_v19 = vld [vmem:[%s681_s3 + $0x30] sm:$0xff]  ;;  %v380_v20 = vld [vmem:[%s681_s3 + $0x28] sm:$0xff]  ;;  %v379_v21 = vld [vmem:[%s681_s3 + $0x20] sm:$0xff] }
  0x3f   :  { %343 = vmatpush.msrb.mxu2 %v163_v36  ;;  %362 = vmatpush.msrb.mxu3 %v180_v37  ;;  %v378_v22 = vld [vmem:[%s681_s3 + $0x18] sm:$0xff]  ;;  %v377_v23 = vld [vmem:[%s681_s3 + $0x10] sm:$0xff]  ;;  %v376_v24 = vld [vmem:[%s681_s3 + $0x8] sm:$0xff] }
  0x40   :  { %303 = vmatpush.msrb.mxu0 %v131_v38  ;;  %322 = vmatpush.msrb.mxu1 %v148_v39  ;;  %v375_v25 = vld [vmem:[%s681_s3] sm:$0xff]  ;;  %v430_v27 = vld [vmem:[#allocation5 + $0x70] sm:$0xff]  ;;  %v429_v28 = vld [vmem:[#allocation5 + $0x68] sm:$0xff] }
  0x41   :  { %344 = vmatpush.msrb.mxu2 %v162_v40  ;;  %363 = vmatpush.msrb.mxu3 %v179_v41  ;;  %v431_v26 = vld [vmem:[#allocation5 + $0x78] sm:$0xff]  ;;  %v428_v29 = vld [vmem:[#allocation5 + $0x60] sm:$0xff]  ;;  %v426_v32 = vld [vmem:[#allocation5 + $0x50] sm:$0xff] }
  0x42   :  { %304 = vmatpush.msrb.mxu0 %v130_v42  ;;  %323 = vmatpush.msrb.mxu1 %v147_v43  ;;  %v427_v30 = vld [vmem:[#allocation5 + $0x58] sm:$0xff]  ;;  %v425_v33 = vld [vmem:[#allocation5 + $0x48] sm:$0xff]  ;;  %v424_v36 = vld [vmem:[#allocation5 + $0x40] sm:$0xff] }
  0x43   :  { %345 = vmatpush.msrb.mxu2 %v161_v44  ;;  %364 = vmatpush.msrb.mxu3 %v178_v45  ;;  %v480_v31 = vld [vmem:[%s680_s2] ss:$0 sm:$0xff]  ;;  %v422_v41 = vld [vmem:[#allocation5 + $0x30] sm:$0xff]  ;;  %v421_v44 = vld [vmem:[#allocation5 + $0x28] sm:$0xff] }
  0x44   :  { %270 = vmatmul.f32.vlgmr.msra.gmra.mxu2 %v200_v46  ;;  %305 = vmatpush.msrb.mxu0 %v129_v47  ;;  %v423_v38 = vld [vmem:[#allocation5 + $0x38] sm:$0xff]  ;;  %v420_v46 = vld [vmem:[#allocation5 + $0x20] sm:$0xff] }
  0x45   :  { %324 = vmatpush.msrb.mxu1 %v146_v48  ;;  %346 = vmatpush.msrb.mxu2 %v160_v49  ;;  %v419_v49 = vld [vmem:[#allocation5 + $0x18] sm:$0xff] }
  0x46   :  { %365 = vmatpush.msrb.mxu3 %v177_v50  ;;  %230 = vmatmul.f32.vlgmr.msra.gmra.mxu0 %v198_v51 }
  0x47   :  { %290 = vmatmul.f32.vlgmr.msra.gmra.mxu3 %v201_v52  ;;  %306 = vmatpush.msrb.mxu0 %v128_v53 }
  0x48   :  { %325 = vmatpush.msrb.mxu1 %v145_v54  ;;  %347 = vmatpush.msrb.mxu2 %v159_v55 }
  0x49   :  { %366 = vmatpush.msrb.mxu3 %v176_v56  ;;  %250 = vmatmul.f32.vlgmr.msra.gmra.mxu1 %v199_v57  ;;  %v418_v57 = vld [vmem:[#allocation5 + $0x10] sm:$0xff] }
  0x4a   :  { %307 = vmatpush.msrb.mxu0 %v127_v58  ;;  %326 = vmatpush.msrb.mxu1 %v144_v59  ;;  %v417_v58 = vld [vmem:[#allocation5 + $0x8] sm:$0xff]  ;;  %v416_v59 = vld [vmem:[#allocation5] sm:$0xff] }
  0x4b   :  { %348 = vmatpush.msrb.mxu2 %v158_v60  ;;  %367 = vmatpush.msrb.mxu3 %v175_v61  ;;  %v481_v60 = vld [vmem:[%s682_s4] ss:$0 sm:$0xff] }
  0x4c   :  { %308 = vmatpush.msrb.mxu0 %v126_v62  ;;  %327 = vmatpush.msrb.mxu1 %v143_v63 }
  0x4d   :  { %349 = vmatpush.msrb.mxu2 %v157_v0  ;;  %368 = vmatpush.msrb.mxu3 %v174_v1  ;;  %v482_v0 = vld [vmem:[%s684_s6] ss:$0 sm:$0xff] }
  0x4e   :  { %350 = vmatmul.f32.vlgmr.msrb.gmra.mxu2 %v204_v2  ;;  %309 = vmatpush.msrb.mxu0 %v125_v3 }
  0x4f   :  { %328 = vmatpush.msrb.mxu1 %v142_v4  ;;  %369 = vmatpush.msrb.mxu3 %v173_v5 }
  0x50   :  { %310 = vmatmul.f32.vlgmr.msrb.gmra.mxu0 %v202_v6  ;;  %370 = vmatmul.f32.vlgmr.msrb.gmra.mxu3 %v205_v7 }
  0x51   :  { %329 = vmatpush.msrb.mxu1 %v141_v8  ;;  %395 = vmatpush.msra.mxu0 %v390_v9 }
  0x52   :  { %330 = vmatmul.f32.vlgmr.msrb.gmra.mxu1 %v203_v10 }
  0x53   :  { %396 = vmatpush.msra.mxu0 %v389_v11  ;;  %436 = vmatpush.msra.mxu1 %v431_v26 }
  0x55   :  { %397 = vmatpush.msra.mxu0 %v388_v12  ;;  %437 = vmatpush.msra.mxu1 %v430_v27 }
  0x57   :  { %398 = vmatpush.msra.mxu0 %v387_v13  ;;  %438 = vmatpush.msra.mxu1 %v429_v28 }
  0x59   :  { %399 = vmatpush.msra.mxu0 %v386_v14  ;;  %439 = vmatpush.msra.mxu1 %v428_v29 }
  0x5b   :  { %400 = vmatpush.msra.mxu0 %v385_v15  ;;  %440 = vmatpush.msra.mxu1 %v427_v30 }
  0x5d   :  { %401 = vmatpush.msra.mxu0 %v384_v16  ;;  %441 = vmatpush.msra.mxu1 %v426_v32 }
  0x5f   :  { %402 = vmatpush.msra.mxu0 %v383_v17  ;;  %442 = vmatpush.msra.mxu1 %v425_v33 }
  0x61   :  { %403 = vmatpush.msra.mxu0 %v382_v18  ;;  %443 = vmatpush.msra.mxu1 %v424_v36 }
  0x63   :  { %404 = vmatpush.msra.mxu0 %v381_v19  ;;  %444 = vmatpush.msra.mxu1 %v423_v38 }
  0x65   :  { %405 = vmatpush.msra.mxu0 %v380_v20  ;;  %445 = vmatpush.msra.mxu1 %v422_v41 }
  0x67   :  { %406 = vmatpush.msra.mxu0 %v379_v21  ;;  %446 = vmatpush.msra.mxu1 %v421_v44 }
  0x69   :  { %407 = vmatpush.msra.mxu0 %v378_v22  ;;  %447 = vmatpush.msra.mxu1 %v420_v46 }
  0x6b   :  { %408 = vmatpush.msra.mxu0 %v377_v23  ;;  %448 = vmatpush.msra.mxu1 %v419_v49 }
  0x6d   :  { %409 = vmatpush.msra.mxu0 %v376_v24  ;;  %449 = vmatpush.msra.mxu1 %v418_v57 }
  0x6f   :  { %410 = vmatpush.msra.mxu0 %v375_v25  ;;  %450 = vmatpush.msra.mxu1 %v417_v58 }
  0x71   :  { %451 = vmatpush.msra.mxu1 %v416_v59 }
  0xc3   :  { %v231_v34 = vpop.f32.mrf.mxu0 }
  0xc4   :  { %v232_v35 = vadd.f32 %v480_v31, %v231_v34 }
  0xc6   :  { %v251_v37 = vpop.f32.mrf.mxu1 }
  0xc7   :  { %v252_v39 = vadd.f32 %v251_v37, %v232_v35  ;;  %v271_v40 = vpop.f32.mrf.mxu2 }
  0xc9   :  { %v272_v42 = vadd.f32 %v271_v40, %v252_v39 }
  0xca   :  { %v291_v43 = vpop.f32.mrf.mxu3 }
  0xcb   :  { %v292_v45 = vadd.f32 %v291_v43, %v272_v42 }
  0xcd   :  { %v311_v47 = vpop.f32.mrf.mxu0 }
  0xce   :  { %v312_v48 = vadd.f32 %v311_v47, %v292_v45 }
  0xcf   :  { %v331_v50 = vpop.f32.mrf.mxu1 }
  0xd0   :  { %v332_v51 = vadd.f32 %v331_v50, %v312_v48 }
  0xd1   :  { %v351_v52 = vpop.f32.mrf.mxu2 }
  0xd2   :  { %v352_v53 = vadd.f32 %v351_v52, %v332_v51 }
  0xd3   :  { %v371_v54 = vpop.f32.mrf.mxu3 }
  0xd4   :  { %v372_v55 = vadd.f32 %v371_v54, %v352_v53 }
  0xd6   :  { %v374_v56 = vmax.f32 %v372_v55, 0.0 }
  0xd8   :  { %411 = vmatmul.f32.vlgmr.msra.gmra.mxu0 %v374_v56 }
 0x155   :  { %v412_v61 = vpop.f32.mrf.mxu0 }
 0x156   :  { %v413_v62 = vadd.f32 %v481_v60, %v412_v61 }
 0x158   :  { %v415_v63 = vmax.f32 %v413_v62, 0.0 }
 0x15a   :  { %452 = vmatmul.f32.vlgmr.msra.gmra.mxu1 %v415_v63 }
 0x1d7   :  { %v453_v1 = vpop.f32.mrf.mxu1 }
 0x1d8   :  { %v454_v2 = vadd.f32 %v482_v0, %v453_v1 }
 0x1da   :  { %456 = vst [vmem:[#allocation7] sm:$0x3] %v454_v2 }
 0x1db   :  { %467 = dma.vmem_to_hbm [thread:$0]  %s463_s25, 32, %s465_s28, [#allocation4]  }
 0x1dc   :  { %559 = dma.done.wait [#allocation4], 32  }
 0x1dd   :  { %560 = vsyncadd [#allocation4], 4294967264 }
 0x1de   :  { %472 = vsyncpa [#allocation3], 1 }
 0x1df   :  { %473 = vsyncpa [#allocation6], 1 }
 0x1e0   :  { %474 = vsyncpa [#allocation4], 1 }

</bundles_post_ra>
